<compile_context>
chip_gen: v5e
topology: v5e:2x2
jax: 0.10.0
libtpu: 0.0.40
codegen_flags: <defaults>
</compile_context>

<pallas_src>
import jax
import jax.numpy as jnp
import numpy as np
from jax.experimental import pallas as pl
from jax.experimental.pallas import tpu as pltpu


def _policy_kernel(x_ref, w1_ref, b1_ref, w2_ref, b2_ref, w3_ref, b3_ref, o_ref):
    # Fused 3-layer MLP on one (S, TM) feature-major batch tile.
    x = x_ref[...]                                                     # (S, TM)
    h1 = jnp.tanh(
        jnp.dot(w1_ref[...], x, preferred_element_type=jnp.float32) + b1_ref[...]
    )                                                                  # (H, TM)
    h2 = jnp.tanh(
        jnp.dot(w2_ref[...], h1, preferred_element_type=jnp.float32) + b2_ref[...]
    )                                                                  # (H, TM)
    out = (
        jnp.dot(w3_ref[...], h2, preferred_element_type=jnp.float32) + b3_ref[...]
    )                                                                  # (A, TM)
    o_ref[...] = out.astype(o_ref.dtype)


def _round_up(n, m):
    return ((n + m - 1) // m) * m


def _cdiv(a, b):
    return -(-a // b)


def policy_forward(x, params, *, tm_max=4096):
    """x: (B, state_size) float32.  params hold PyTorch-oriented (out, in) weights."""
    w1, b1, w2, b2, w3, b3 = (
        params["w1"], params["b1"], params["w2"],
        params["b2"], params["w3"], params["b3"],
    )
    B, S = x.shape
    A = w3.shape[0]

    # Feature-major input: batch on the lane axis (layout plumbing, not compute).
    xT = x.T                                                           # (S, B)

    if B <= tm_max:
        # Single grid step; block shape == full array dims, so any B is legal
        # and no padding is required.
        TM, Bp, n_tiles = B, B, 1
        xTp = xT
    else:
        # Tile the lane (batch) axis: TM must be a multiple of 128.  Pick the
        # tile count first, then the smallest 128-multiple TM covering it, so
        # padding stays small (< 128 rows per tile) even for awkward B.
        B128 = _round_up(B, 128)
        n_tiles = _cdiv(B128, tm_max)
        TM = _round_up(_cdiv(B128, n_tiles), 128)
        Bp = n_tiles * TM
        xTp = jnp.pad(xT, ((0, 0), (0, Bp - B)))

    # Weights/biases: full-array blocks, same block for every grid step
    # (VMEM-resident, DMA'd once).
    resident = lambda arr: pl.BlockSpec(arr.shape, lambda i: (0, 0))

    outT = pl.pallas_call(
        _policy_kernel,
        out_shape=jax.ShapeDtypeStruct((A, Bp), jnp.float32),
        grid=(n_tiles,),
        in_specs=[
            pl.BlockSpec((S, TM), lambda i: (0, i)),   # x^T: tiled over batch lanes
            resident(w1), resident(b1),
            resident(w2), resident(b2),
            resident(w3), resident(b3),
        ],
        out_specs=pl.BlockSpec((A, TM), lambda i: (0, i)),  # lane-dense (A, TM) slab
        compiler_params=pltpu.CompilerParams(
            dimension_semantics=("parallel",)),
    )(xTp, w1, b1, w2, b2, w3, b3)

    out = outT.T                                                       # (Bp, A)
    return out if Bp == B else out[:B]


def normc_init(key, shape, std):
    """Replicates normc_initializer on a PyTorch-oriented (out, in) weight."""
    out = jax.random.normal(key, shape, dtype=jnp.float32)
    out = out * (std / jnp.sqrt(jnp.sum(jnp.square(out), axis=0, keepdims=True)))
    return out


def init_policy_params(key, state_size, action_size, hidden_size):
    k1, k2, k3 = jax.random.split(key, 3)
    # Keep PyTorch nn.Linear (out_features, in_features) orientation: it matches
    # the column-normalized init AND the feature-major kernel (W @ x^T).
    w1 = normc_init(k1, (hidden_size, state_size), std=1.0)
    w2 = normc_init(k2, (hidden_size, hidden_size), std=1.0)
    w3 = normc_init(k3, (action_size, hidden_size), std=0.01)
    return {
        "w1": w1, "b1": jnp.zeros((hidden_size, 1), jnp.float32),
        "w2": w2, "b2": jnp.zeros((hidden_size, 1), jnp.float32),
        "w3": w3, "b3": jnp.zeros((action_size, 1), jnp.float32),
    }


def _reference(x, params):
    h1 = jnp.tanh(x @ params["w1"].T + params["b1"].T)
    h2 = jnp.tanh(h1 @ params["w2"].T + params["b2"].T)
    return h2 @ params["w3"].T + params["b3"].T


if __name__ == "__main__":
    state_size, action_size, hidden_size = 8, 4, 32

    key = jax.random.PRNGKey(0)
    kp, kx_small, kx_big, kx_odd = jax.random.split(key, 4)
    params = init_policy_params(kp, state_size, action_size, hidden_size)

    # Small canonical case (batch=2): single grid step, block == full array dims.
    batch = 2
    x = jax.random.normal(kx_small, (batch, state_size), dtype=jnp.float32)
    out = jax.block_until_ready(policy_forward(x, params))
    np.testing.assert_allclose(
        np.asarray(out), np.asarray(_reference(x, params)), rtol=1e-5, atol=1e-5
    )
    assert out.shape == (batch, action_size)

    # Larger case (batch=512, tm_max=256): exercises the multi-tile grid with
    # resident weights and lane-dense (A, 256) output slabs.
    big_batch = 512
    xb = jax.random.normal(kx_big, (big_batch, state_size), dtype=jnp.float32)
    outb = jax.block_until_ready(policy_forward(xb, params, tm_max=256))
    np.testing.assert_allclose(
        np.asarray(outb), np.asarray(_reference(xb, params)), rtol=1e-5, atol=1e-5
    )
    assert outb.shape == (big_batch, action_size)

    # Awkward batch (300, tm_max=128): exercises minimal lane padding + slice.
    odd_batch = 300
    xo = jax.random.normal(kx_odd, (odd_batch, state_size), dtype=jnp.float32)
    outo = jax.block_until_ready(policy_forward(xo, params, tm_max=128))
    np.testing.assert_allclose(
        np.asarray(outo), np.asarray(_reference(xo, params)), rtol=1e-5, atol=1e-5
    )
    assert outo.shape == (odd_batch, action_size)

    print("KERNEL_OK")
</pallas_src>

<mosaic_0001>
module attributes {stable_mosaic.version = 11 : i64} {
  func.func @_policy_kernel(%arg0: i32, %arg1: memref<8x2xf32, #tpu.memory_space<vmem>>, %arg2: memref<32x8xf32, #tpu.memory_space<vmem>>, %arg3: memref<32x1xf32, #tpu.memory_space<vmem>>, %arg4: memref<32x32xf32, #tpu.memory_space<vmem>>, %arg5: memref<32x1xf32, #tpu.memory_space<vmem>>, %arg6: memref<4x32xf32, #tpu.memory_space<vmem>>, %arg7: memref<4x1xf32, #tpu.memory_space<vmem>>, %arg8: memref<4x2xf32, #tpu.memory_space<vmem>>) attributes {dimension_semantics = [#tpu.dimension_semantics<parallel>], iteration_bounds = array<i64: 1>, scalar_prefetch = 0 : i64, scratch_operands = 0 : i64, tpu.core_type = #tpu.core_type<tc>, window_params = [{transform_indices = @transform_0, window_bounds = array<i64: 8, 2>}, {pipeline_mode = #tpu.pipeline_mode<synchronous>, transform_indices = @transform_1, window_bounds = array<i64: 32, 8>}, {pipeline_mode = #tpu.pipeline_mode<synchronous>, transform_indices = @transform_2, window_bounds = array<i64: 32, 1>}, {pipeline_mode = #tpu.pipeline_mode<synchronous>, transform_indices = @transform_3, window_bounds = array<i64: 32, 32>}, {pipeline_mode = #tpu.pipeline_mode<synchronous>, transform_indices = @transform_4, window_bounds = array<i64: 32, 1>}, {pipeline_mode = #tpu.pipeline_mode<synchronous>, transform_indices = @transform_5, window_bounds = array<i64: 4, 32>}, {pipeline_mode = #tpu.pipeline_mode<synchronous>, transform_indices = @transform_6, window_bounds = array<i64: 4, 1>}, {transform_indices = @transform_7, window_bounds = array<i64: 4, 2>}]} {
    %c0 = arith.constant 0 : index
    %c0_0 = arith.constant 0 : index
    %0 = vector.load %arg1[%c0, %c0_0] : memref<8x2xf32, #tpu.memory_space<vmem>>, vector<8x2xf32>
    %c0_1 = arith.constant 0 : index
    %c0_2 = arith.constant 0 : index
    %1 = vector.load %arg2[%c0_1, %c0_2] : memref<32x8xf32, #tpu.memory_space<vmem>>, vector<32x8xf32>
    %cst = arith.constant dense<0.000000e+00> : vector<32x2xf32>
    %2 = tpu.matmul %1, %0, %cst {dimension_numbers = #tpu.dot_dimension_numbers<[1], [0], [0], [1], [0, 0, 1, 1], [], []>} : vector<32x8xf32>, vector<8x2xf32>, vector<32x2xf32> -> vector<32x2xf32>
    %c0_3 = arith.constant 0 : index
    %c0_4 = arith.constant 0 : index
    %3 = vector.load %arg3[%c0_3, %c0_4] : memref<32x1xf32, #tpu.memory_space<vmem>>, vector<32x1xf32>
    %4 = vector.broadcast %3 : vector<32x1xf32> to vector<32x2xf32>
    %5 = arith.addf %2, %4 : vector<32x2xf32>
    %6 = math.tanh %5 : vector<32x2xf32>
    %c0_5 = arith.constant 0 : index
    %c0_6 = arith.constant 0 : index
    %7 = vector.load %arg4[%c0_5, %c0_6] : memref<32x32xf32, #tpu.memory_space<vmem>>, vector<32x32xf32>
    %cst_7 = arith.constant dense<0.000000e+00> : vector<32x2xf32>
    %8 = tpu.matmul %7, %6, %cst_7 {dimension_numbers = #tpu.dot_dimension_numbers<[1], [0], [0], [1], [0, 0, 1, 1], [], []>} : vector<32x32xf32>, vector<32x2xf32>, vector<32x2xf32> -> vector<32x2xf32>
    %c0_8 = arith.constant 0 : index
    %c0_9 = arith.constant 0 : index
    %9 = vector.load %arg5[%c0_8, %c0_9] : memref<32x1xf32, #tpu.memory_space<vmem>>, vector<32x1xf32>
    %10 = vector.broadcast %9 : vector<32x1xf32> to vector<32x2xf32>
    %11 = arith.addf %8, %10 : vector<32x2xf32>
    %12 = math.tanh %11 : vector<32x2xf32>
    %c0_10 = arith.constant 0 : index
    %c0_11 = arith.constant 0 : index
    %13 = vector.load %arg6[%c0_10, %c0_11] : memref<4x32xf32, #tpu.memory_space<vmem>>, vector<4x32xf32>
    %cst_12 = arith.constant dense<0.000000e+00> : vector<4x2xf32>
    %14 = tpu.matmul %13, %12, %cst_12 {dimension_numbers = #tpu.dot_dimension_numbers<[1], [0], [0], [1], [0, 0, 1, 1], [], []>} : vector<4x32xf32>, vector<32x2xf32>, vector<4x2xf32> -> vector<4x2xf32>
    %c0_13 = arith.constant 0 : index
    %c0_14 = arith.constant 0 : index
    %15 = vector.load %arg7[%c0_13, %c0_14] : memref<4x1xf32, #tpu.memory_space<vmem>>, vector<4x1xf32>
    %16 = vector.broadcast %15 : vector<4x1xf32> to vector<4x2xf32>
    %17 = arith.addf %14, %16 : vector<4x2xf32>
    %c0_15 = arith.constant 0 : index
    %c0_16 = arith.constant 0 : index
    %18 = vector.load %arg8[%c0_15, %c0_16] : memref<4x2xf32, #tpu.memory_space<vmem>>, vector<4x2xf32>
    tpu.vector_store %arg8[%c0_15, %c0_16], %17 {strides = array<i32>} : memref<4x2xf32, #tpu.memory_space<vmem>>, vector<4x2xf32>,
    return
  }
  func.func @transform_0(%arg0: i32) -> (i32, i32) {
    %c0_i32 = arith.constant 0 : i32
    %c0_i32_0 = arith.constant 0 : i32
    return %c0_i32, %arg0 : i32, i32
  }
  func.func @transform_1(%arg0: i32) -> (i32, i32) {
    %c0_i32 = arith.constant 0 : i32
    %c0_i32_0 = arith.constant 0 : i32
    %c0_i32_1 = arith.constant 0 : i32
    return %c0_i32, %c0_i32_0 : i32, i32
  }
  func.func @transform_2(%arg0: i32) -> (i32, i32) {
    %c0_i32 = arith.constant 0 : i32
    %c0_i32_0 = arith.constant 0 : i32
    %c0_i32_1 = arith.constant 0 : i32
    return %c0_i32, %c0_i32_0 : i32, i32
  }
  func.func @transform_3(%arg0: i32) -> (i32, i32) {
    %c0_i32 = arith.constant 0 : i32
    %c0_i32_0 = arith.constant 0 : i32
    %c0_i32_1 = arith.constant 0 : i32
    return %c0_i32, %c0_i32_0 : i32, i32
  }
  func.func @transform_4(%arg0: i32) -> (i32, i32) {
    %c0_i32 = arith.constant 0 : i32
    %c0_i32_0 = arith.constant 0 : i32
    %c0_i32_1 = arith.constant 0 : i32
    return %c0_i32, %c0_i32_0 : i32, i32
  }
  func.func @transform_5(%arg0: i32) -> (i32, i32) {
    %c0_i32 = arith.constant 0 : i32
    %c0_i32_0 = arith.constant 0 : i32
    %c0_i32_1 = arith.constant 0 : i32
    return %c0_i32, %c0_i32_0 : i32, i32
  }
  func.func @transform_6(%arg0: i32) -> (i32, i32) {
    %c0_i32 = arith.constant 0 : i32
    %c0_i32_0 = arith.constant 0 : i32
    %c0_i32_1 = arith.constant 0 : i32
    return %c0_i32, %c0_i32_0 : i32, i32
  }
  func.func @transform_7(%arg0: i32) -> (i32, i32) {
    %c0_i32 = arith.constant 0 : i32
    %c0_i32_0 = arith.constant 0 : i32
    return %c0_i32, %arg0 : i32, i32
  }
}

</mosaic_0001>

<bundles_post_ra>
// kernel: tpu_custom_call.1
= control target key start
LH: loop header
LB: loop body
LE: loop exit
PB: predicated region body
PF: predicated region fallthrough
CT: control target
= control target key end

     0   :  { %vm55_vm0 = vcmask 64512   ;;  %v245_v2 = vmov 0   ;;  %vm129_vm1 = vcmask 261120   ;;  %vm205_vm2 = vcmask 11264   ;;  %s355_s0 = inlined_call_operand.vmem [shape: f32[8,2], index: 0, kind: input, shape index: {}]   ;;  %s356_s1 = inlined_call_operand.vmem [shape: f32[32,8], index: 1, kind: input, shape index: {}]   ;;  %s357_s2 = inlined_call_operand.vmem [shape: f32[32,1], index: 2, kind: input, shape index: {}]   ;;  %s358_s4 = inlined_call_operand.vmem [shape: f32[32,1], index: 4, kind: input, shape index: {}]   ;;  %s359_s6 = inlined_call_operand.vmem [shape: f32[4,1], index: 6, kind: input, shape index: {}]   ;;  %s360_s3 = inlined_call_operand.vmem [shape: f32[32,32], index: 3, kind: input, shape index: {}]   ;;  %s361_s5 = inlined_call_operand.vmem [shape: f32[4,32], index: 5, kind: input, shape index: {}]   ;;  %s362_s7 = inlined_call_operand.vmem [shape: f32[4,2], index: 7, kind: output, shape index: {}]  }
   0x1   :  { %v26_v0 = vld [vmem:[%s355_s0] sm:$0xff]  ;;  %227 = vset.pattern.permute.xlu1 %v245_v2  ;;  %226 = vset.pattern.permute.xlu0 %v245_v2  ;;  %v30_v3 = vld [vmem:[%s356_s1 + $0x18] sm:$0xff]  ;;  %v32_v5 = vld [vmem:[%s357_s2 + $0x8] sm:$0xff] }
   0x2   :  { %v27_v1 = vld [vmem:[%s356_s1] sm:$0xff]  ;;  %83 = vmatpush.msra.mxu0 %v26_v0  ;;  %220 = vmatpush.msra.mxu2 %v26_v0  ;;  %v34_v4 = vld [vmem:[%s357_s2 + $0x18] sm:$0xff]  ;;  %v28_v6 = vld [vmem:[%s356_s1 + $0x8] sm:$0xff] }
   0x3   :  { %211 = vmatmul.msk.f32.vlgmr.msra.gmra.mxu0 %vm55_vm0, %v27_v1  ;;  %214 = vmatmul.msk.f32.vlgmr.msra.gmra.mxu2 %vm55_vm0, %v30_v3  ;;  %v33_v7 = vld [vmem:[%s357_s2 + $0x10] sm:$0xff]  ;;  %v31_v8 = vld [vmem:[%s357_s2] sm:$0xff]  ;;  %v106_v10 = vld [vmem:[%s358_s4 + $0x8] sm:$0xff] }
   0x4   :  { %52 = vperm.xlu0 %226, %v34_v4   ;;  %42 = vperm.xlu1 %227, %v32_v5   ;;  %v29_v9 = vld [vmem:[%s356_s1 + $0x10] sm:$0xff]  ;;  %v105_v11 = vld [vmem:[%s358_s4] sm:$0xff]  ;;  %v108_v17 = vld [vmem:[%s358_s4 + $0x18] sm:$0xff] }
   0x5   :  { %228 = vset.pattern.permute.xlu2 %v245_v2  ;;  %v107_v19 = vld [vmem:[%s358_s4 + $0x10] sm:$0xff]  ;;  %v176_v27 = vld [vmem:[%s359_s6] sm:$0xf]  ;;  %v102_v33 = vld [vmem:[%s360_s3 + $0x8] sm:$0xff] }
   0x6   :  { %126 = vperm.xlu2 %228, %v108_v17   ;;  %v101_v30 = vld [vmem:[%s360_s3] sm:$0xff]  ;;  %v103_v31 = vld [vmem:[%s360_s3 + $0x10] sm:$0xff]  ;;  %v104_v34 = vld [vmem:[%s360_s3 + $0x18] sm:$0xff] }
   0x7   :  { %v175_v50 = vld [vmem:[%s361_s5] sm:$0xf] }
   0xb   :  { %212 = vmatmul.msk.f32.gmra.mxu0 %vm55_vm0, %v28_v6 }
   0xc   :  { %47 = vperm.xlu0 %226, %v33_v7   ;;  %37 = vperm.xlu1 %227, %v31_v8  }
   0xe   :  { %121 = vperm.xlu2 %228, %v107_v19  }
  0x13   :  { %213 = vmatmul.msk.f32.gmra.mxu0 %vm55_vm0, %v29_v9 }
  0x14   :  { %116 = vperm.xlu0 %226, %v106_v10   ;;  %111 = vperm.xlu1 %227, %v105_v11  }
  0x16   :  { %179 = vperm.xlu2 %228, %v176_v27  }
  0x60   :  { %v127_v35 = vpop.permute.xlu2 %126 }
  0x68   :  { %v122_v38 = vpop.permute.xlu2 %121 }
  0x70   :  { %v180_v52 = vpop.permute.xlu2 %179 }
  0x76   :  { %v53_v13 = vpop.permute.xlu0 %52  ;;  %v43_v14 = vpop.permute.xlu1 %42 }
  0x7e   :  { %v48_v21 = vpop.permute.xlu0 %47  ;;  %v38_v22 = vpop.permute.xlu1 %37 }
  0x80   :  { %v85_v12 = vpop.f32.mrf.mxu0 }
  0x81   :  { %v86_v26 = vadd.f32 %v85_v12, %v38_v22 }
  0x86   :  { %v94_v15 = vpop.f32.mrf.mxu2  ;;  %v117_v43 = vpop.permute.xlu0 %116 }
  0x87   :  { %v95_v16 = vadd.f32 %v94_v15, %v53_v13  ;;  %v112_v45 = vpop.permute.xlu1 %111 }
  0x88   :  { %v88_v18 = vpop.f32.mrf.mxu0 }
  0x89   :  { %229 = vtanh.f32 %v95_v16  ;;  %v89_v24 = vadd.f32 %v88_v18, %v43_v14 }
  0x8f   :  { %v230_v20 = vpop.eup %229 }
  0x90   :  { %v91_v23 = vpop.f32.mrf.mxu0  ;;  %154 = vmatpush.msra.mxu1 %v230_v20  ;;  %221 = vmatpush.msra.mxu3 %v230_v20 }
  0x91   :  { %v92_v25 = vadd.f32 %v91_v23, %v48_v21 }
  0x93   :  { %231 = vtanh.f32 %v92_v25 }
  0x94   :  { %233 = vtanh.f32 %v89_v24 }
  0x95   :  { %235 = vtanh.f32 %v86_v26 }
  0x99   :  { %v232_v28 = vpop.eup %231 }
  0x9a   :  { %155 = vmatpush.msra.mxu1 %v232_v28  ;;  %222 = vmatpush.msra.mxu3 %v232_v28  ;;  %v234_v29 = vpop.eup %233 }
  0x9b   :  { %v236_v32 = vpop.eup %235 }
  0x9c   :  { %156 = vmatpush.msra.mxu1 %v234_v29  ;;  %223 = vmatpush.msra.mxu3 %v234_v29 }
  0x9e   :  { %157 = vmatpush.msra.mxu1 %v236_v32  ;;  %224 = vmatpush.msra.mxu3 %v236_v32 }
  0x9f   :  { %215 = vmatmul.msk.f32.vlgmr.msra.gmra.mxu1 %vm129_vm1, %v101_v30  ;;  %217 = vmatmul.msk.f32.vlgmr.msra.gmra.mxu3 %vm129_vm1, %v103_v31 }
  0xa7   :  { %216 = vmatmul.msk.f32.gmra.mxu1 %vm129_vm1, %v102_v33  ;;  %218 = vmatmul.msk.f32.gmra.mxu3 %vm129_vm1, %v104_v34 }
 0x11c   :  { %v159_v36 = vpop.f32.mrf.mxu1 }
 0x11d   :  { %v160_v46 = vadd.f32 %v159_v36, %v112_v45 }
 0x122   :  { %v165_v37 = vpop.f32.mrf.mxu3 }
 0x123   :  { %v166_v41 = vadd.f32 %v165_v37, %v122_v38 }
 0x124   :  { %v162_v39 = vpop.f32.mrf.mxu1 }
 0x125   :  { %v163_v44 = vadd.f32 %v162_v39, %v117_v43 }
 0x12a   :  { %v168_v40 = vpop.f32.mrf.mxu3 }
 0x12b   :  { %v169_v42 = vadd.f32 %v168_v40, %v127_v35 }
 0x12d   :  { %237 = vtanh.f32 %v169_v42 }
 0x12e   :  { %239 = vtanh.f32 %v166_v41 }
 0x12f   :  { %241 = vtanh.f32 %v163_v44 }
 0x130   :  { %243 = vtanh.f32 %v160_v46 }
 0x133   :  { %v238_v47 = vpop.eup %237 }
 0x134   :  { %197 = vmatpush.msrb.mxu2 %v238_v47  ;;  %v240_v48 = vpop.eup %239 }
 0x135   :  { %v242_v49 = vpop.eup %241 }
 0x136   :  { %198 = vmatpush.msrb.mxu2 %v240_v48  ;;  %v244_v51 = vpop.eup %243 }
 0x138   :  { %199 = vmatpush.msrb.mxu2 %v242_v49 }
 0x13a   :  { %200 = vmatpush.msrb.mxu2 %v244_v51 }
 0x13b   :  { %219 = vmatmul.msk.f32.vlgmr.msrb.gmra.mxu2 %vm129_vm1, %v175_v50 }
 0x1be   :  { %v202_v53 = vpop.f32.mrf.mxu2 }
 0x1bf   :  { %v203_v54 = vadd.f32 %v202_v53, %v180_v52 }
 0x1c1   :  { %206 = vst.msk [vmem:[%s362_s7] sm:$0xf] %vm205_vm2, %v203_v54 }

</bundles_post_ra>
